<compile_context>
chip_gen: v6e
topology: v6e:2x2x1
jax: 0.10.0
libtpu: 0.0.40
codegen_flags: <defaults>
</compile_context>

<pallas_src>
import jax
import jax.numpy as jnp
from jax import lax
from jax.experimental import pallas as pl
from jax.experimental.pallas import tpu as pltpu
import numpy as np


def _make_postproc_kernel(num_classes: int, use_focal_loss: bool):
    sentinel = num_classes  # larger than any valid class index

    def kernel(logits_ref, boxes_ref, scale_ref,
               scores_ref, labels_ref, boxes_out_ref):
        # logits_ref : (Bt, C, Q)  classes on sublanes, queries on lanes
        # boxes_ref  : (Bt, 4, Q)  rows are [cx, cy, w, h]
        # scale_ref  : (Bt, 2, 1)  rows are [img_w, img_h]
        logits = logits_ref[...].astype(jnp.float32)            # (Bt, C, Q)

        # ---- classification: max / argmax over classes on raw logits ----
        # sigmoid / softmax are monotonic, so argmax(prob) == argmax(logits)
        # and the transcendental is evaluated once per query, not per class.
        m = jnp.max(logits, axis=1)                             # (Bt, Q)
        if use_focal_loss:
            scores = 1.0 / (1.0 + jnp.exp(-m))                  # sigmoid(max)
        else:
            denom = jnp.sum(jnp.exp(logits - m[:, None, :]), axis=1)
            scores = 1.0 / denom                                # max of softmax
        scores_ref[...] = scores

        cls_idx = lax.broadcasted_iota(jnp.int32, logits.shape, 1)   # (Bt, C, Q)
        labels_ref[...] = jnp.min(
            jnp.where(logits == m[:, None, :], cls_idx, sentinel), axis=1)

        # ---- boxes: cxcywh -> xyxy (pure VPU) and scale to image size ----
        bx = boxes_ref[...].astype(jnp.float32)                 # (Bt, 4, Q)
        cxcy = bx[:, 0:2, :]                                    # (Bt, 2, Q)
        wh_half = 0.5 * bx[:, 2:4, :]                           # (Bt, 2, Q)
        scale = scale_ref[...]                                  # (Bt, 2, 1) [w, h]
        lo = (cxcy - wh_half) * scale                           # scaled (x0, y0)
        hi = (cxcy + wh_half) * scale                           # scaled (x1, y1)
        boxes_out_ref[...] = jnp.concatenate([lo, hi], axis=1)  # (Bt, 4, Q)

    return kernel


def _pick_batch_tile(batch: int, requested: int) -> int:
    bt = max(1, min(requested, batch))
    while batch % bt != 0:
        bt -= 1
    return bt


def rtdetr_postprocess(pred_logits, pred_boxes, target_sizes,
                       use_focal_loss: bool = True,
                       score_threshold: float = 0.0,
                       batch_tile: int = 8):
    """Returns (scores (B,Q), labels (B,Q) int32, boxes (B,Q,4) xyxy, keep (B,Q) bool)."""
    B, Q, C = pred_logits.shape
    assert pred_boxes.shape == (B, Q, 4)
    assert target_sizes.shape == (B, 2)

    Bt = _pick_batch_tile(B, batch_tile)
    grid = (B // Bt,)

    # Layout plumbing (outside the kernel): put queries on lanes.
    logits_t = jnp.transpose(pred_logits, (0, 2, 1))            # (B, C, Q)
    boxes_t = jnp.transpose(pred_boxes, (0, 2, 1))              # (B, 4, Q)
    ts = target_sizes.astype(jnp.float32)
    scale_wh = jnp.stack([ts[:, 1], ts[:, 0]], axis=1)[:, :, None]  # (B, 2, 1)

    kernel = _make_postproc_kernel(C, use_focal_loss)

    grid_spec = pltpu.PrefetchScalarGridSpec(
        num_scalar_prefetch=0,
        grid=grid,
        in_specs=[
            pl.BlockSpec((Bt, C, Q), lambda i: (i, 0, 0)),
            pl.BlockSpec((Bt, 4, Q), lambda i: (i, 0, 0)),
            pl.BlockSpec((Bt, 2, 1), lambda i: (i, 0, 0)),
        ],
        out_specs=[
            pl.BlockSpec((Bt, Q), lambda i: (i, 0)),
            pl.BlockSpec((Bt, Q), lambda i: (i, 0)),
            pl.BlockSpec((Bt, 4, Q), lambda i: (i, 0, 0)),
        ],
    )

    scores, labels, boxes_t_out = pl.pallas_call(
        kernel,
        grid_spec=grid_spec,
        out_shape=(
            jax.ShapeDtypeStruct((B, Q), jnp.float32),
            jax.ShapeDtypeStruct((B, Q), jnp.int32),
            jax.ShapeDtypeStruct((B, 4, Q), jnp.float32),
        ),
        compiler_params=pltpu.CompilerParams(
            dimension_semantics=("parallel",)),
    )(logits_t, boxes_t, scale_wh)

    boxes = jnp.transpose(boxes_t_out, (0, 2, 1))               # (B, Q, 4)

    # Glue: static-shape keep mask (score_threshold filter).
    keep = scores > score_threshold
    # TODO(synk): ragged per-image gathering, class-wise NMS and top-k capping
    # produce data-dependent output shapes and have no clean Pallas equivalent;
    # results are returned dense with the `keep` mask instead.
    return scores, labels, boxes, keep


def _reference(pred_logits, pred_boxes, target_sizes, use_focal_loss=True):
    if use_focal_loss:
        prob = jax.nn.sigmoid(pred_logits)
    else:
        prob = jax.nn.softmax(pred_logits, axis=-1)
    scores = prob.max(-1)
    labels = prob.argmax(-1).astype(jnp.int32)
    cx, cy, w, h = jnp.split(pred_boxes, 4, axis=-1)
    xyxy = jnp.concatenate([cx - 0.5 * w, cy - 0.5 * h,
                            cx + 0.5 * w, cy + 0.5 * h], axis=-1)
    img_h = target_sizes[:, 0]
    img_w = target_sizes[:, 1]
    scale = jnp.stack([img_w, img_h, img_w, img_h], axis=1)     # (B, 4)
    boxes = xyxy * scale[:, None, :]
    return scores, labels, boxes


if __name__ == "__main__":
    key = jax.random.PRNGKey(0)
    B, Q, C = 2, 8, 16       # small synthetic shapes (num_queries=8, num_classes=16)
    k1, k2 = jax.random.split(key)
    pred_logits = jax.random.normal(k1, (B, Q, C), dtype=jnp.float32)
    pred_boxes = jax.random.uniform(k2, (B, Q, 4), dtype=jnp.float32,
                                    minval=0.1, maxval=0.9)
    target_sizes = jnp.array([[480.0, 640.0], [320.0, 512.0]], dtype=jnp.float32)

    # focal-loss (sigmoid) branch
    scores, labels, boxes, keep = jax.block_until_ready(
        rtdetr_postprocess(pred_logits, pred_boxes, target_sizes,
                           use_focal_loss=True))
    ref_scores, ref_labels, ref_boxes = _reference(
        pred_logits, pred_boxes, target_sizes, use_focal_loss=True)
    assert np.allclose(np.asarray(scores), np.asarray(ref_scores), atol=1e-5)
    assert np.array_equal(np.asarray(labels), np.asarray(ref_labels))
    assert np.allclose(np.asarray(boxes), np.asarray(ref_boxes), atol=1e-4)
    assert bool(np.all(np.asarray(keep)))   # score_threshold=0.0, sigmoid > 0

    # softmax branch
    scores2, labels2, boxes2, _ = jax.block_until_ready(
        rtdetr_postprocess(pred_logits, pred_boxes, target_sizes,
                           use_focal_loss=False))
    ref_scores2, ref_labels2, ref_boxes2 = _reference(
        pred_logits, pred_boxes, target_sizes, use_focal_loss=False)
    assert np.allclose(np.asarray(scores2), np.asarray(ref_scores2), atol=1e-5)
    assert np.array_equal(np.asarray(labels2), np.asarray(ref_labels2))
    assert np.allclose(np.asarray(boxes2), np.asarray(ref_boxes2), atol=1e-4)

    print("KERNEL_OK")
</pallas_src>

<mosaic_0001>
module attributes {stable_mosaic.version = 11 : i64} {
  func.func @kernel(%arg0: i32, %arg1: memref<2x16x8xf32, #tpu.memory_space<vmem>>, %arg2: memref<2x4x8xf32, #tpu.memory_space<vmem>>, %arg3: memref<2x2x1xf32, #tpu.memory_space<vmem>>, %arg4: memref<2x8xf32, #tpu.memory_space<vmem>>, %arg5: memref<2x8xi32, #tpu.memory_space<vmem>>, %arg6: memref<2x4x8xf32, #tpu.memory_space<vmem>>) attributes {dimension_semantics = [#tpu.dimension_semantics<parallel>], iteration_bounds = array<i64: 1>, scalar_prefetch = 0 : i64, scratch_operands = 0 : i64, tpu.core_type = #tpu.core_type<tc>, window_params = [{transform_indices = @transform_0, window_bounds = array<i64: 2, 16, 8>}, {transform_indices = @transform_1, window_bounds = array<i64: 2, 4, 8>}, {transform_indices = @transform_2, window_bounds = array<i64: 2, 2, 1>}, {transform_indices = @transform_3, window_bounds = array<i64: 2, 8>}, {transform_indices = @transform_4, window_bounds = array<i64: 2, 8>}, {transform_indices = @transform_5, window_bounds = array<i64: 2, 4, 8>}]} {
    %c0 = arith.constant 0 : index
    %c0_0 = arith.constant 0 : index
    %c0_1 = arith.constant 0 : index
    %0 = vector.load %arg1[%c0, %c0_0, %c0_1] : memref<2x16x8xf32, #tpu.memory_space<vmem>>, vector<2x16x8xf32>
    %cst = arith.constant dense<0xFF800000> : vector<2x8xf32>
    %1 = vector.multi_reduction <maximumf>, %0, %cst [1] : vector<2x16x8xf32> to vector<2x8xf32>
    %cst_2 = arith.constant 0.000000e+00 : f32
    %2 = vector.broadcast %cst_2 : f32 to vector<2x8xf32>
    %3 = arith.subf %2, %1 : vector<2x8xf32>
    %4 = math.exp %3 : vector<2x8xf32>
    %cst_3 = arith.constant 1.000000e+00 : f32
    %5 = vector.broadcast %cst_3 : f32 to vector<2x8xf32>
    %6 = arith.addf %5, %4 : vector<2x8xf32>
    %cst_4 = arith.constant 1.000000e+00 : f32
    %7 = vector.broadcast %cst_4 : f32 to vector<2x8xf32>
    %8 = arith.divf %7, %6 : vector<2x8xf32>
    %c0_5 = arith.constant 0 : index
    %c0_6 = arith.constant 0 : index
    %9 = vector.load %arg4[%c0_5, %c0_6] : memref<2x8xf32, #tpu.memory_space<vmem>>, vector<2x8xf32>
    tpu.vector_store %arg4[%c0_5, %c0_6], %8 {strides = array<i32>} : memref<2x8xf32, #tpu.memory_space<vmem>>, vector<2x8xf32>,
    %10 = tpu.iota {dimensions = array<i32: 1>} : vector<2x16x8xi32>
    %11 = vector.shape_cast %1 : vector<2x8xf32> to vector<2x1x8xf32>
    %12 = vector.broadcast %11 : vector<2x1x8xf32> to vector<2x16x8xf32>
    %13 = arith.cmpf oeq, %0, %12 : vector<2x16x8xf32>
    %c16_i32 = arith.constant 16 : i32
    %14 = vector.broadcast %c16_i32 : i32 to vector<2x16x8xi32>
    %15 = arith.select %13, %10, %14 : vector<2x16x8xi1>, vector<2x16x8xi32>
    %cst_7 = arith.constant dense<2147483647> : vector<2x8xi32>
    %16 = vector.multi_reduction <minsi>, %15, %cst_7 [1] : vector<2x16x8xi32> to vector<2x8xi32>
    %c0_8 = arith.constant 0 : index
    %c0_9 = arith.constant 0 : index
    %17 = vector.load %arg5[%c0_8, %c0_9] : memref<2x8xi32, #tpu.memory_space<vmem>>, vector<2x8xi32>
    tpu.vector_store %arg5[%c0_8, %c0_9], %16 {strides = array<i32>} : memref<2x8xi32, #tpu.memory_space<vmem>>, vector<2x8xi32>,
    %c0_10 = arith.constant 0 : index
    %c0_11 = arith.constant 0 : index
    %c0_12 = arith.constant 0 : index
    %18 = vector.load %arg2[%c0_10, %c0_11, %c0_12] : memref<2x4x8xf32, #tpu.memory_space<vmem>>, vector<2x4x8xf32>
    %19 = vector.extract_strided_slice %18 {offsets = [0, 0, 0], sizes = [2, 2, 8], strides = [1, 1, 1]} : vector<2x4x8xf32> to vector<2x2x8xf32>
    %20 = vector.extract_strided_slice %18 {offsets = [0, 2, 0], sizes = [2, 2, 8], strides = [1, 1, 1]} : vector<2x4x8xf32> to vector<2x2x8xf32>
    %cst_13 = arith.constant 5.000000e-01 : f32
    %21 = vector.broadcast %cst_13 : f32 to vector<2x2x8xf32>
    %22 = arith.mulf %21, %20 : vector<2x2x8xf32>
    %c0_14 = arith.constant 0 : index
    %c0_15 = arith.constant 0 : index
    %c0_16 = arith.constant 0 : index
    %23 = vector.load %arg3[%c0_14, %c0_15, %c0_16] : memref<2x2x1xf32, #tpu.memory_space<vmem>>, vector<2x2x1xf32>
    %24 = arith.subf %19, %22 : vector<2x2x8xf32>
    %25 = vector.broadcast %23 : vector<2x2x1xf32> to vector<2x2x8xf32>
    %26 = arith.mulf %24, %25 : vector<2x2x8xf32>
    %27 = arith.addf %19, %22 : vector<2x2x8xf32>
    %28 = vector.broadcast %23 : vector<2x2x1xf32> to vector<2x2x8xf32>
    %29 = arith.mulf %27, %28 : vector<2x2x8xf32>
    %30 = tpu.concatenate %26, %29 in 1 : vector<2x2x8xf32>, vector<2x2x8xf32> -> vector<2x4x8xf32>
    %c0_17 = arith.constant 0 : index
    %c0_18 = arith.constant 0 : index
    %c0_19 = arith.constant 0 : index
    %31 = vector.load %arg6[%c0_17, %c0_18, %c0_19] : memref<2x4x8xf32, #tpu.memory_space<vmem>>, vector<2x4x8xf32>
    tpu.vector_store %arg6[%c0_17, %c0_18, %c0_19], %30 {strides = array<i32>} : memref<2x4x8xf32, #tpu.memory_space<vmem>>, vector<2x4x8xf32>,
    return
  }
  func.func @transform_0(%arg0: i32) -> (i32, i32, i32) {
    %c0_i32 = arith.constant 0 : i32
    %c0_i32_0 = arith.constant 0 : i32
    %c0_i32_1 = arith.constant 0 : i32
    return %arg0, %c0_i32, %c0_i32_0 : i32, i32, i32
  }
  func.func @transform_1(%arg0: i32) -> (i32, i32, i32) {
    %c0_i32 = arith.constant 0 : i32
    %c0_i32_0 = arith.constant 0 : i32
    %c0_i32_1 = arith.constant 0 : i32
    return %arg0, %c0_i32, %c0_i32_0 : i32, i32, i32
  }
  func.func @transform_2(%arg0: i32) -> (i32, i32, i32) {
    %c0_i32 = arith.constant 0 : i32
    %c0_i32_0 = arith.constant 0 : i32
    %c0_i32_1 = arith.constant 0 : i32
    return %arg0, %c0_i32, %c0_i32_0 : i32, i32, i32
  }
  func.func @transform_3(%arg0: i32) -> (i32, i32) {
    %c0_i32 = arith.constant 0 : i32
    %c0_i32_0 = arith.constant 0 : i32
    return %arg0, %c0_i32 : i32, i32
  }
  func.func @transform_4(%arg0: i32) -> (i32, i32) {
    %c0_i32 = arith.constant 0 : i32
    %c0_i32_0 = arith.constant 0 : i32
    return %arg0, %c0_i32 : i32, i32
  }
  func.func @transform_5(%arg0: i32) -> (i32, i32, i32) {
    %c0_i32 = arith.constant 0 : i32
    %c0_i32_0 = arith.constant 0 : i32
    %c0_i32_1 = arith.constant 0 : i32
    return %arg0, %c0_i32, %c0_i32_0 : i32, i32, i32
  }
}

</mosaic_0001>

<bundles_post_ra>
// kernel: tpu_custom_call.1
= control target key start
LH: loop header
LB: loop body
LE: loop exit
PB: predicated region body
PF: predicated region fallthrough
CT: control target
= control target key end

     0   :  { %11 = vsyncpa [#allocation3], 0  ;;  %v264_v1 = vmov 0   ;;  %s345_s0 = inlined_call_operand.vmem [shape: f32[2,16,8], index: 0, kind: input, shape index: {}]   ;;  %s346_s1 = inlined_call_operand.vmem [shape: f32[2,4,8], index: 1, kind: input, shape index: {}]   ;;  %s347_s2 = inlined_call_operand.vmem [shape: f32[2,2,1], index: 2, kind: input, shape index: {}]   ;;  %s348_s3 = inlined_call_operand.hbm [shape: f32[2,8], index: 3, kind: output, shape index: {0}]   ;;  %s349_s4 = inlined_call_operand.hbm [shape: s32[2,8], index: 4, kind: output, shape index: {1}]   ;;  %s350_s5 = inlined_call_operand.hbm [shape: f32[2,4,8], index: 5, kind: output, shape index: {2}]  }
   0x1   :  { %v104_v0 = vld [vmem:[%s347_s2] sm:$0x3]  ;;  %191 = vset.pattern.permute.xlu0 %v264_v1 }
   0x2   :  { %12 = vsyncpa [#allocation5], 0  ;;  %116 = vperm.xlu0 %191, %v104_v0   ;;  %v19_v2 = vld [vmem:[%s345_s0] sm:$0xff]  ;;  %v20_v3 = vld [vmem:[%s345_s0 + $0x8] sm:$0xff]  ;;  %vm23_vm0 = vcmask 64512   ;;  %v61_v14 = vlaneseq  ;;  %vm56_vm12 = vcmask 1041409  }
   0x3   :  { %v21_v4 = vld [vmem:[%s345_s0 + $0x10] sm:$0xff]  ;;  %v105_v5 = vld [vmem:[%s347_s2 + $0x2] sm:$0x3]  ;;  %v22_v6 = vld [vmem:[%s345_s0 + $0x18] sm:$0xff]  ;;  %v24_v7 = vsel %vm23_vm0, %v19_v2, -inf  ;;  %v25_v8 = vsel %vm23_vm0, %v20_v3, -inf }
   0x4   :  { %v26_v9 = vmax.f32 %v24_v7, %v25_v8  ;;  %v33_v10 = vsel %vm23_vm0, %v21_v4, -inf  ;;  %v34_v11 = vsel %vm23_vm0, %v22_v6, -inf  ;;  %v62_v19 = vshrl.u32 %v61_v14, 7  ;;  %s265_s0 = smov [#allocation4]  }
   0x5   :  { %v35_v13 = vmax.f32 %v33_v10, %v34_v11  ;;  %s158_s2 = sshll.u32 %s265_s0, 4  ;;  %vm59_vm13 = vcmask 58368   ;;  %s159_s2 = int_to_ptr.vmem [resolvable:$true] %s158_s2 }
   0x6   :  { %121 = vperm.xlu0 %191, %v105_v5   ;;  %v27_v12 = vrot.slane %v26_v9, 4  ;;  %v63_v24 = vadd.s32 8, %v62_v19  ;;  %s200_s30 = scalar_lea.vmem %s159_s2, 32  ;;  %p205_p1 = scmp.lt.s32.totalorder %s159_s2, %s159_s2 }
   0x7   :  { %v36_v16 = vrot.slane %v35_v13, 4  ;;  %p201_p0 = scmp.ne.s32.totalorder %s159_s2, %s200_s30  ;;  %p206_p2 = scmp.lt.s32.totalorder %s200_s30, %s200_s30 }
   0x8   :  { %v28_v15 = vmax.f32 %v26_v9, %v27_v12 }
   0x9   :  { %v37_v18 = vmax.f32 %v35_v13, %v36_v16  ;;  %p207_p3 = por %p206_p2, %p205_p1 }
   0xa   :  { %v29_v17 = vrot.slane %v28_v15, 2 }
   0xb   :  { %v38_v21 = vrot.slane %v37_v18, 2  ;;  %p208_p4 = pnand %p207_p3, %p201_p0 }
   0xc   :  { %v30_v20 = vmax.f32 %v28_v15, %v29_v17 }
   0xd   :  { %v39_v23 = vmax.f32 %v37_v18, %v38_v21 }
   0xe   :  { %v31_v22 = vrot.slane %v30_v20, 1 }
   0xf   :  { %v40_v26 = vrot.slane %v39_v23, 1 }
  0x10   :  { %v32_v25 = vmax.f32 %v30_v20, %v31_v22 }
  0x11   :  { %v41_v27 = vmax.f32 %v39_v23, %v40_v26 }
  0x12   :  { %v42_v28 = vsub.f32 0.0, %v32_v25  ;;  %vm64_vm1 = vcmp.eq.f32.partialorder %v19_v2, %v32_v25  ;;  %vm65_vm2 = vcmp.eq.f32.partialorder %v20_v3, %v32_v25 }
  0x13   :  { %v68_v29 = vsel %vm64_vm1, %v62_v19, 16  ;;  %v69_v30 = vsel %vm65_vm2, %v63_v24, 16  ;;  %v43_v31 = vsub.f32 0.0, %v41_v27  ;;  %vm66_vm3 = vcmp.eq.f32.partialorder %v21_v4, %v41_v27 }
  0x14   :  { %v44_v32 = vmul.f32 1.442695, %v42_v28  ;;  %vm67_vm4 = vcmp.eq.f32.partialorder %v22_v6, %v41_v27  ;;  %v70_v33 = vsel %vm66_vm3, %v62_v19, 16  ;;  %v72_v35 = vsel %vm23_vm0, %v68_v29, 2147483647 }
  0x15   :  { %v71_v34 = vsel %vm67_vm4, %v63_v24, 16  ;;  %v73_v36 = vsel %vm23_vm0, %v69_v30, 2147483647  ;;  %v46_v37 = vmul.f32 1.442695, %v43_v31 }
  0x16   :  { %192 = vpow2.f32 %v44_v32  ;;  %vm74_vm5 = vcmp.lt.s32.totalorder %v72_v35, %v73_v36  ;;  %v85_v38 = vsel %vm23_vm0, %v70_v33, 2147483647  ;;  %v86_v40 = vsel %vm23_vm0, %v71_v34, 2147483647 }
  0x17   :  { %v75_v39 = vsel %vm74_vm5, %v72_v35, %v73_v36  ;;  %194 = vpow2.f32 %v46_v37  ;;  %vm87_vm6 = vcmp.lt.s32.totalorder %v85_v38, %v86_v40 }
  0x18   :  { %v76_v41 = vrot.slane %v75_v39, 4  ;;  %v88_v42 = vsel %vm87_vm6, %v85_v38, %v86_v40 }
  0x19   :  { %v89_v43 = vrot.slane %v88_v42, 4 }
  0x1a   :  { %vm77_vm7 = vcmp.lt.s32.totalorder %v75_v39, %v76_v41 }
  0x1b   :  { %v78_v44 = vsel %vm77_vm7, %v75_v39, %v76_v41  ;;  %vm90_vm8 = vcmp.lt.s32.totalorder %v88_v42, %v89_v43 }
  0x1c   :  { %v79_v45 = vrot.slane %v78_v44, 2  ;;  %v91_v46 = vsel %vm90_vm8, %v88_v42, %v89_v43 }
  0x1d   :  { %v92_v47 = vrot.slane %v91_v46, 2 }
  0x1e   :  { %vm80_vm9 = vcmp.lt.s32.totalorder %v78_v44, %v79_v45 }
  0x1f   :  { %v81_v48 = vsel %vm80_vm9, %v78_v44, %v79_v45  ;;  %vm93_vm10 = vcmp.lt.s32.totalorder %v91_v46, %v92_v47 }
  0x20   :  { %v82_v49 = vrot.slane %v81_v48, 1  ;;  %v94_v50 = vsel %vm93_vm10, %v91_v46, %v92_v47 }
  0x21   :  { %v95_v51 = vrot.slane %v94_v50, 1 }
  0x22   :  { %vm83_vm11 = vcmp.lt.s32.totalorder %v81_v48, %v82_v49 }
  0x23   :  { %v193_v52 = vpop.eup %192  ;;  %v84_v53 = vsel %vm83_vm11, %v81_v48, %v82_v49  ;;  %vm96_vm14 = vcmp.lt.s32.totalorder %v94_v50, %v95_v51 }
  0x24   :  { %v48_v54 = vadd.f32 1.0, %v193_v52  ;;  %v195_v55 = vpop.eup %194  ;;  %v97_v56 = vsel %vm96_vm14, %v94_v50, %v95_v51 }
  0x25   :  { %v49_v57 = vadd.f32 1.0, %v195_v55  ;;  %v98_v58 = vsel %vm56_vm12, %v97_v56, %v84_v53 }
  0x26   :  { %196 = vrcp.f32 %v48_v54  ;;  %99 = vst.msk [vmem:[#allocation4] sm:$0x3] %vm59_vm13, %v98_v58 }
  0x27   :  { %198 = vrcp.f32 %v49_v57 }
  0x28   :  { %211 = shalt.err (!%p208_p4)
}
  0x29   :  { %161 = dma.vmem_to_hbm [thread:$0]  %s159_s2, 32, %s349_s4, [#allocation5]  }
  0x2a   :  { %s266_s8 = smov [#allocation2]  }
  0x2b   :  { %s148_s9 = sshll.u32 %s266_s8, 4  ;;  %s149_s9 = int_to_ptr.vmem [resolvable:$true] %s148_s9 }
  0x2c   :  { %s220_s10 = scalar_lea.vmem %s149_s9, 32  ;;  %p225_p6 = scmp.lt.s32.totalorder %s149_s9, %s149_s9 }
  0x2d   :  { %p221_p5 = scmp.ne.s32.totalorder %s149_s9, %s220_s10  ;;  %p226_p7 = scmp.lt.s32.totalorder %s220_s10, %s220_s10 }
  0x2f   :  { %p227_p8 = por %p226_p7, %p225_p6 }
  0x31   :  { %p228_p9 = pnand %p227_p8, %p221_p5 }
  0x33   :  { %v197_v59 = vpop.eup %196 }
  0x34   :  { %v199_v60 = vpop.eup %198 }
  0x35   :  { %v57_v61 = vsel %vm56_vm12, %v199_v60, %v197_v59 }
  0x36   :  { %60 = vst.msk [vmem:[#allocation2] sm:$0x3] %vm59_vm13, %v57_v61 }
  0x37   :  { %231 = shalt.err (!%p228_p9)
}
  0x38   :  { %151 = dma.vmem_to_hbm [thread:$0]  %s149_s9, 32, %s348_s3, [#allocation3]   ;;  %v100_v62 = vld [vmem:[%s346_s1] sm:$0xf]  ;;  %v101_v0 = vld [vmem:[%s346_s1 + $0x4] sm:$0xf] }
  0x39   :  { %v102_v63 = vmul.f32 0.5, %v100_v62  ;;  %v103_v2 = vmul.f32 0.5, %v101_v0  ;;  %vm136_vm15 = vcmask 1041408   ;;  %vm139_vm0 = vcmask 60416   ;;  %s267_s3 = smov [#allocation6]  }
  0x3a   :  { %s167_s16 = sshll.u32 %s267_s3, 4  ;;  %s168_s16 = int_to_ptr.vmem [resolvable:$true] %s167_s16 }
  0x3b   :  { %v108_v1 = vrot.slane %v102_v63, 2  ;;  %v109_v4 = vrot.slane %v103_v2, 2  ;;  %s240_s1 = scalar_lea.vmem %s168_s16, 128  ;;  %p245_p11 = scmp.lt.s32.totalorder %s168_s16, %s168_s16 }
  0x3c   :  { %p241_p10 = scmp.ne.s32.totalorder %s168_s16, %s240_s1  ;;  %p246_p12 = scmp.lt.s32.totalorder %s240_s1, %s240_s1 }
  0x3d   :  { %v126_v3 = vadd.f32 %v108_v1, %v100_v62  ;;  %v112_v5 = vsub.f32 %v100_v62, %v108_v1  ;;  %v127_v8 = vadd.f32 %v109_v4, %v101_v0  ;;  %v113_v11 = vsub.f32 %v101_v0, %v109_v4 }
  0x3e   :  { %p247_p13 = por %p246_p12, %p245_p11 }
  0x40   :  { %p248_p0 = pnand %p247_p13, %p241_p10 }
  0x7d   :  { %v117_v6 = vpop.permute.xlu0 %116 }
  0x7e   :  { %v128_v7 = vmul.f32 %v126_v3, %v117_v6  ;;  %v124_v9 = vmul.f32 %v117_v6, %v112_v5 }
  0x80   :  { %v132_v10 = vrot.slane %v128_v7, 6 }
  0x81   :  { %v122_v12 = vpop.permute.xlu0 %121 }
  0x82   :  { %v137_v13 = vsel %vm136_vm15, %v124_v9, %v132_v10  ;;  %v129_v14 = vmul.f32 %v127_v8, %v122_v12  ;;  %v125_v15 = vmul.f32 %v122_v12, %v113_v11 }
  0x83   :  { %140 = vst.msk [vmem:[#allocation6] sm:$0xf] %vm139_vm0, %v137_v13 }
  0x84   :  { %v133_v16 = vrot.slane %v129_v14, 6 }
  0x86   :  { %v138_v17 = vsel %vm136_vm15, %v125_v15, %v133_v16 }
  0x87   :  { %141 = vst.msk [vmem:[#allocation6 + $0x4] sm:$0xf] %vm139_vm0, %v138_v17 }
  0x88   :  { %251 = shalt.err (!%p248_p0)
}
  0x89   :  { %s268_s17 = smov 64   ;;  %s269_s18 = smov 4  }
  0x8a   :  { %173 = dma.vmem_to_hbm [thread:$0]  %s168_s16, 128, %s350_s5, [#allocation5], %s268_s17, %s268_s17, %s269_s18  }
  0x8b   :  { %260 = dma.done.wait [#allocation3], 32  }
  0x8c   :  { %261 = vsyncadd [#allocation3], 4294967264 }
  0x8d   :  { %262 = dma.done.wait [#allocation5], 160  }
  0x8e   :  { %263 = vsyncadd [#allocation5], 4294967136 }
  0x8f   :  { %183 = vsyncpa [#allocation3], 1 }
  0x90   :  { %184 = vsyncpa [#allocation5], 1 }

</bundles_post_ra>
